<compile_context>
chip_gen: v5e
topology: v5e:2x2
jax: 0.10.0
libtpu: 0.0.40
codegen_flags: <defaults>
</compile_context>

<pallas_src>
import functools

import jax
import jax.numpy as jnp
from jax import lax
from jax.experimental import pallas as pl
from jax.experimental.pallas import tpu as pltpu


def _round_up(n, m):
    return ((n + m - 1) // m) * m


def _tpu_generation():
    """Best-effort TPU generation detection (4/5/6/7...)."""
    try:
        kind = jax.devices()[0].device_kind.lower()
    except Exception:
        return 6
    for gen in (7, 6, 5, 4):
        if f"v{gen}" in kind:
            return gen
    return 6


def mlp_kernel(x_ref, w_in_ref, b_in_ref,
               w1_ref, b1_ref, w2_ref, b2_ref,
               w_out_ref, b_out_ref, o_ref,
               *, hidden_layers, act_dtype):
    """One batch-block of the full MLP forward pass (weights VMEM-resident)."""
    cdtype = w1_ref.dtype                         # MXU operand dtype (bf16)

    x = x_ref[...]                                # (bm, in_p)
    w_in = w_in_ref[...]                          # (in_p, hid_p)
    w1 = w1_ref[...]                              # (hid_p, hid_p)
    w2 = w2_ref[...]                              # (hid_p, hid_p)
    # Biases stay at their natural (1, hid_p) shape: the add broadcasts over
    # sublanes on the VPU for free -> no (bm, hid) materialization / spills.
    b_in = b_in_ref[...]
    b1 = b1_ref[...]
    b2 = b2_ref[...]

    def affine(a, w, b):
        acc = jnp.dot(a.astype(cdtype), w, preferred_element_type=jnp.float32)
        return acc.astype(act_dtype) + b          # bias-add in act_dtype

    h = affine(x, w_in, b_in)

    def hidden_block(_, hh):
        h1 = jnp.maximum(affine(hh, w1, b1), 0)   # ReLU in act_dtype
        return affine(h1, w2, b2)

    if hidden_layers > 0:
        # Small unroll: keeps MXU push pipelining without blowing vreg
        # live ranges / code size for large H.
        h = lax.fori_loop(0, hidden_layers, hidden_block, h,
                          unroll=min(4, hidden_layers))

    # Output layer weights/bias are only read after the hidden loop so they do
    # not stay live through it.
    out = affine(h, w_out_ref[...], b_out_ref[...])
    o_ref[...] = out.astype(o_ref.dtype)


def prepare_params(params, *, compute_dtype=jnp.bfloat16,
                   act_dtype=jnp.float32):
    """Pad feature dims to multiples of 128 and cast ONCE (reused per call)."""
    w_in, b_in, w1, b1, w2, b2, w_out, b_out = params
    in_f, hid_f = w_in.shape
    out_f = w_out.shape[1]
    in_p = _round_up(in_f, 128)
    hid_p = _round_up(hid_f, 128)
    out_p = _round_up(out_f, 128)

    def pad2(a, rows, cols, dtype):
        return jnp.pad(a, ((0, rows - a.shape[0]),
                           (0, cols - a.shape[1]))).astype(dtype)

    return dict(
        w_in=pad2(w_in, in_p, hid_p, compute_dtype),
        b_in=pad2(b_in, 1, hid_p, act_dtype),
        w1=pad2(w1, hid_p, hid_p, compute_dtype),
        b1=pad2(b1, 1, hid_p, act_dtype),
        w2=pad2(w2, hid_p, hid_p, compute_dtype),
        b2=pad2(b2, 1, hid_p, act_dtype),
        w_out=pad2(w_out, hid_p, out_p, compute_dtype),
        b_out=pad2(b_out, 1, out_p, act_dtype),
        dims=(in_f, hid_f, out_f, in_p, hid_p, out_p),
    )


def ai_model_forward(x, prepared, hidden_layers, *,
                     block_batch=512, compute_dtype=jnp.bfloat16,
                     act_dtype=jnp.float32, vmem_limit_bytes=96 * 1024 * 1024,
                     ensure_two_blocks=False):
    """Wrapper: pad x, pick batch blocking, call the Pallas kernel."""
    in_f, hid_f, out_f, in_p, hid_p, out_p = prepared["dims"]
    batch = x.shape[0]

    # Batch blocking: minimal padding (bm = round_up(cdiv(batch, grid), 8));
    # optionally force >=2 blocks so both v7x TensorCores get work.
    grid_n = max(pl.cdiv(batch, block_batch), 1)
    if ensure_two_blocks and grid_n == 1 and batch > 8:
        grid_n = 2
    bm = _round_up(pl.cdiv(batch, grid_n), 8)
    batch_p = bm * grid_n

    # Only x is padded/cast per call; weights were prepared once.
    xp = jnp.pad(x, ((0, batch_p - batch),
                     (0, in_p - in_f))).astype(compute_dtype)

    # TODO(synk): add a hidden-dim-tiled (pltpu.emit_pipeline) fallback when
    # resident weights (~ (2*hid_p^2 + (in_p+out_p)*hid_p) * 2B) exceed the
    # VMEM budget (hid_p >~ 3K on v7x).

    def resident(shape):
        # Full-array block, constant index -> VMEM-resident across the grid;
        # single-buffer it (default double-buffering would waste 2x the
        # weight footprint for a block that never changes).
        return pl.BlockSpec(shape, lambda i: (0, 0),
                            pipeline_mode=pl.Buffered(1))

    operands = (xp,
                prepared["w_in"], prepared["b_in"],
                prepared["w1"], prepared["b1"],
                prepared["w2"], prepared["b2"],
                prepared["w_out"], prepared["b_out"])

    # Advisory cost estimate (helps XLA schedule around the custom call).
    flops = 2 * batch_p * (in_p * hid_p
                           + 2 * hidden_layers * hid_p * hid_p
                           + hid_p * out_p)
    bytes_accessed = sum(int(a.size) * a.dtype.itemsize for a in operands)
    bytes_accessed += batch_p * out_p * 4
    cost = pl.CostEstimate(flops=int(flops), transcendentals=0,
                           bytes_accessed=int(bytes_accessed))

    kernel = functools.partial(mlp_kernel, hidden_layers=hidden_layers,
                               act_dtype=act_dtype)

    out_padded = pl.pallas_call(
        kernel,
        out_shape=jax.ShapeDtypeStruct((batch_p, out_p), jnp.float32),
        grid=(grid_n,),
        in_specs=[
            pl.BlockSpec((bm, in_p), lambda i: (i, 0)),      # x: batch-blocked
            resident((in_p, hid_p)), resident((1, hid_p)),   # W_in, b_in
            resident((hid_p, hid_p)), resident((1, hid_p)),  # W1,   b1
            resident((hid_p, hid_p)), resident((1, hid_p)),  # W2,   b2
            resident((hid_p, out_p)), resident((1, out_p)),  # W_out, b_out
        ],
        out_specs=pl.BlockSpec((bm, out_p), lambda i: (i, 0)),
        compiler_params=pltpu.CompilerParams(
            dimension_semantics=("parallel",),
            vmem_limit_bytes=int(vmem_limit_bytes),
        ),
        cost_estimate=cost,
    )(*operands)

    # Strip batch / lane padding.
    return out_padded[:batch, :out_f].astype(x.dtype)


def init_params(key, input_features, output_features, hidden_features):
    """Deterministic synthetic parameters (PyTorch Linear shapes,
    pre-transposed to (in, out) for the kernel)."""
    ks = jax.random.split(key, 8)
    scale = 0.1

    def lin(kw, kb, fan_in, fan_out):
        w = scale * jax.random.normal(kw, (fan_in, fan_out), jnp.float32)
        b = scale * jax.random.normal(kb, (1, fan_out), jnp.float32)
        return w, b

    w_in, b_in = lin(ks[0], ks[1], input_features, hidden_features)
    w1, b1 = lin(ks[2], ks[3], hidden_features, hidden_features)
    w2, b2 = lin(ks[4], ks[5], hidden_features, hidden_features)
    w_out, b_out = lin(ks[6], ks[7], hidden_features, output_features)
    return (w_in, b_in, w1, b1, w2, b2, w_out, b_out)


def reference_forward(x, params, hidden_layers, *,
                      compute_dtype=jnp.bfloat16, act_dtype=jnp.float32):
    """Same math / precision scheme as the kernel (pure JAX)."""
    w_in, b_in, w1, b1, w2, b2, w_out, b_out = params

    def affine(a, w, b):
        acc = jnp.dot(a.astype(compute_dtype), w.astype(compute_dtype),
                      preferred_element_type=jnp.float32)
        return acc.astype(act_dtype) + b.astype(act_dtype)

    h = affine(x, w_in, b_in)
    for _ in range(hidden_layers):
        h = affine(jnp.maximum(affine(h, w1, b1), 0), w2, b2)
    return affine(h, w_out, b_out).astype(jnp.float32)


if __name__ == "__main__":
    # Small shapes consistent with the module's forward.
    batch = 8
    input_features = 16
    hidden_features = 32
    output_features = 8
    hidden_layers = 3

    gen = _tpu_generation()
    compute_dtype = jnp.bfloat16
    # v6e/v7x have native bf16 VALUs -> carry activations in bf16 (halves the
    # (bm, hid) vreg/VMEM footprint).  v5e has no bf16 VALU -> keep f32.
    act_dtype = jnp.bfloat16 if gen >= 6 else jnp.float32
    # Generation-aware scoped-VMEM budget: leave headroom on v7x (64 MiB
    # physical per TC), use more of v5e/v6e's 128 MiB.
    vmem_limit = (48 if gen >= 7 else 96) * 1024 * 1024

    key = jax.random.PRNGKey(0)
    k_x, k_p = jax.random.split(key)
    x = jax.random.normal(k_x, (batch, input_features), jnp.float32)
    params = init_params(k_p, input_features, output_features, hidden_features)

    # Pad/cast weights once; only x is padded per call.
    prepared = prepare_params(params, compute_dtype=compute_dtype,
                              act_dtype=act_dtype)

    out = ai_model_forward(x, prepared, hidden_layers,
                           compute_dtype=compute_dtype, act_dtype=act_dtype,
                           vmem_limit_bytes=vmem_limit,
                           ensure_two_blocks=(gen >= 7))
    out = jax.block_until_ready(out)

    ref = reference_forward(x, params, hidden_layers,
                            compute_dtype=compute_dtype, act_dtype=act_dtype)
    assert out.shape == (batch, output_features)
    max_err = float(jnp.max(jnp.abs(out - ref)))
    assert jnp.allclose(out, ref, atol=3e-2, rtol=3e-2), max_err

    print("KERNEL_OK")
</pallas_src>

<mosaic_0001>
module attributes {stable_mosaic.version = 11 : i64} {
  func.func @mlp_kernel(%arg0: i32, %arg1: memref<8x128xbf16, #tpu.memory_space<vmem>>, %arg2: memref<128x128xbf16, #tpu.memory_space<vmem>>, %arg3: memref<1x128xbf16, #tpu.memory_space<vmem>>, %arg4: memref<128x128xbf16, #tpu.memory_space<vmem>>, %arg5: memref<1x128xbf16, #tpu.memory_space<vmem>>, %arg6: memref<128x128xbf16, #tpu.memory_space<vmem>>, %arg7: memref<1x128xbf16, #tpu.memory_space<vmem>>, %arg8: memref<128x128xbf16, #tpu.memory_space<vmem>>, %arg9: memref<1x128xbf16, #tpu.memory_space<vmem>>, %arg10: memref<8x128xf32, #tpu.memory_space<vmem>>) attributes {dimension_semantics = [#tpu.dimension_semantics<parallel>], iteration_bounds = array<i64: 1>, scalar_prefetch = 0 : i64, scratch_operands = 0 : i64, tpu.core_type = #tpu.core_type<tc>, window_params = [{transform_indices = @transform_0, window_bounds = array<i64: 8, 128>}, {pipeline_mode = #tpu.pipeline_mode<synchronous>, transform_indices = @transform_1, window_bounds = array<i64: 128, 128>}, {pipeline_mode = #tpu.pipeline_mode<synchronous>, transform_indices = @transform_2, window_bounds = array<i64: 1, 128>}, {pipeline_mode = #tpu.pipeline_mode<synchronous>, transform_indices = @transform_3, window_bounds = array<i64: 128, 128>}, {pipeline_mode = #tpu.pipeline_mode<synchronous>, transform_indices = @transform_4, window_bounds = array<i64: 1, 128>}, {pipeline_mode = #tpu.pipeline_mode<synchronous>, transform_indices = @transform_5, window_bounds = array<i64: 128, 128>}, {pipeline_mode = #tpu.pipeline_mode<synchronous>, transform_indices = @transform_6, window_bounds = array<i64: 1, 128>}, {pipeline_mode = #tpu.pipeline_mode<synchronous>, transform_indices = @transform_7, window_bounds = array<i64: 128, 128>}, {pipeline_mode = #tpu.pipeline_mode<synchronous>, transform_indices = @transform_8, window_bounds = array<i64: 1, 128>}, {transform_indices = @transform_9, window_bounds = array<i64: 8, 128>}]} {
    %c0 = arith.constant 0 : index
    %c0_0 = arith.constant 0 : index
    %0 = vector.load %arg1[%c0, %c0_0] : memref<8x128xbf16, #tpu.memory_space<vmem>>, vector<8x128xbf16>
    %c0_1 = arith.constant 0 : index
    %c0_2 = arith.constant 0 : index
    %1 = vector.load %arg2[%c0_1, %c0_2] : memref<128x128xbf16, #tpu.memory_space<vmem>>, vector<128x128xbf16>
    %c0_3 = arith.constant 0 : index
    %c0_4 = arith.constant 0 : index
    %2 = vector.load %arg4[%c0_3, %c0_4] : memref<128x128xbf16, #tpu.memory_space<vmem>>, vector<128x128xbf16>
    %c0_5 = arith.constant 0 : index
    %c0_6 = arith.constant 0 : index
    %3 = vector.load %arg6[%c0_5, %c0_6] : memref<128x128xbf16, #tpu.memory_space<vmem>>, vector<128x128xbf16>
    %c0_7 = arith.constant 0 : index
    %c0_8 = arith.constant 0 : index
    %4 = vector.load %arg3[%c0_7, %c0_8] : memref<1x128xbf16, #tpu.memory_space<vmem>>, vector<1x128xbf16>
    %c0_9 = arith.constant 0 : index
    %c0_10 = arith.constant 0 : index
    %5 = vector.load %arg5[%c0_9, %c0_10] : memref<1x128xbf16, #tpu.memory_space<vmem>>, vector<1x128xbf16>
    %c0_11 = arith.constant 0 : index
    %c0_12 = arith.constant 0 : index
    %6 = vector.load %arg7[%c0_11, %c0_12] : memref<1x128xbf16, #tpu.memory_space<vmem>>, vector<1x128xbf16>
    %cst = arith.constant dense<0.000000e+00> : vector<8x128xf32>
    %7 = tpu.matmul %0, %1, %cst {dimension_numbers = #tpu.dot_dimension_numbers<[1], [0], [0], [1], [0, 0, 1, 1], [], []>} : vector<8x128xbf16>, vector<128x128xbf16>, vector<8x128xf32> -> vector<8x128xf32>
    %8 = arith.truncf %7 : vector<8x128xf32> to vector<8x128xbf16>
    %9 = vector.broadcast %4 : vector<1x128xbf16> to vector<8x128xbf16>
    %10 = arith.addf %8, %9 : vector<8x128xbf16>
    %c0_i32 = arith.constant 0 : i32
    %cst_13 = arith.constant dense<0.000000e+00> : vector<8x128xf32>
    %11 = tpu.matmul %10, %2, %cst_13 {dimension_numbers = #tpu.dot_dimension_numbers<[1], [0], [0], [1], [0, 0, 1, 1], [], []>} : vector<8x128xbf16>, vector<128x128xbf16>, vector<8x128xf32> -> vector<8x128xf32>
    %12 = arith.truncf %11 : vector<8x128xf32> to vector<8x128xbf16>
    %13 = vector.broadcast %5 : vector<1x128xbf16> to vector<8x128xbf16>
    %14 = arith.addf %12, %13 : vector<8x128xbf16>
    %cst_14 = arith.constant 0.000000e+00 : bf16
    %15 = vector.broadcast %cst_14 : bf16 to vector<8x128xbf16>
    %16 = arith.maximumf %14, %15 : vector<8x128xbf16>
    %cst_15 = arith.constant dense<0.000000e+00> : vector<8x128xf32>
    %17 = tpu.matmul %16, %3, %cst_15 {dimension_numbers = #tpu.dot_dimension_numbers<[1], [0], [0], [1], [0, 0, 1, 1], [], []>} : vector<8x128xbf16>, vector<128x128xbf16>, vector<8x128xf32> -> vector<8x128xf32>
    %18 = arith.truncf %17 : vector<8x128xf32> to vector<8x128xbf16>
    %19 = vector.broadcast %6 : vector<1x128xbf16> to vector<8x128xbf16>
    %20 = arith.addf %18, %19 : vector<8x128xbf16>
    %c1_i32 = arith.constant 1 : i32
    %cst_16 = arith.constant dense<0.000000e+00> : vector<8x128xf32>
    %21 = tpu.matmul %20, %2, %cst_16 {dimension_numbers = #tpu.dot_dimension_numbers<[1], [0], [0], [1], [0, 0, 1, 1], [], []>} : vector<8x128xbf16>, vector<128x128xbf16>, vector<8x128xf32> -> vector<8x128xf32>
    %22 = arith.truncf %21 : vector<8x128xf32> to vector<8x128xbf16>
    %23 = vector.broadcast %5 : vector<1x128xbf16> to vector<8x128xbf16>
    %24 = arith.addf %22, %23 : vector<8x128xbf16>
    %cst_17 = arith.constant 0.000000e+00 : bf16
    %25 = vector.broadcast %cst_17 : bf16 to vector<8x128xbf16>
    %26 = arith.maximumf %24, %25 : vector<8x128xbf16>
    %cst_18 = arith.constant dense<0.000000e+00> : vector<8x128xf32>
    %27 = tpu.matmul %26, %3, %cst_18 {dimension_numbers = #tpu.dot_dimension_numbers<[1], [0], [0], [1], [0, 0, 1, 1], [], []>} : vector<8x128xbf16>, vector<128x128xbf16>, vector<8x128xf32> -> vector<8x128xf32>
    %28 = arith.truncf %27 : vector<8x128xf32> to vector<8x128xbf16>
    %29 = vector.broadcast %6 : vector<1x128xbf16> to vector<8x128xbf16>
    %30 = arith.addf %28, %29 : vector<8x128xbf16>
    %c2_i32 = arith.constant 2 : i32
    %cst_19 = arith.constant dense<0.000000e+00> : vector<8x128xf32>
    %31 = tpu.matmul %30, %2, %cst_19 {dimension_numbers = #tpu.dot_dimension_numbers<[1], [0], [0], [1], [0, 0, 1, 1], [], []>} : vector<8x128xbf16>, vector<128x128xbf16>, vector<8x128xf32> -> vector<8x128xf32>
    %32 = arith.truncf %31 : vector<8x128xf32> to vector<8x128xbf16>
    %33 = vector.broadcast %5 : vector<1x128xbf16> to vector<8x128xbf16>
    %34 = arith.addf %32, %33 : vector<8x128xbf16>
    %cst_20 = arith.constant 0.000000e+00 : bf16
    %35 = vector.broadcast %cst_20 : bf16 to vector<8x128xbf16>
    %36 = arith.maximumf %34, %35 : vector<8x128xbf16>
    %cst_21 = arith.constant dense<0.000000e+00> : vector<8x128xf32>
    %37 = tpu.matmul %36, %3, %cst_21 {dimension_numbers = #tpu.dot_dimension_numbers<[1], [0], [0], [1], [0, 0, 1, 1], [], []>} : vector<8x128xbf16>, vector<128x128xbf16>, vector<8x128xf32> -> vector<8x128xf32>
    %38 = arith.truncf %37 : vector<8x128xf32> to vector<8x128xbf16>
    %39 = vector.broadcast %6 : vector<1x128xbf16> to vector<8x128xbf16>
    %40 = arith.addf %38, %39 : vector<8x128xbf16>
    %c0_22 = arith.constant 0 : index
    %c0_23 = arith.constant 0 : index
    %41 = vector.load %arg8[%c0_22, %c0_23] : memref<128x128xbf16, #tpu.memory_space<vmem>>, vector<128x128xbf16>
    %c0_24 = arith.constant 0 : index
    %c0_25 = arith.constant 0 : index
    %42 = vector.load %arg9[%c0_24, %c0_25] : memref<1x128xbf16, #tpu.memory_space<vmem>>, vector<1x128xbf16>
    %cst_26 = arith.constant dense<0.000000e+00> : vector<8x128xf32>
    %43 = tpu.matmul %40, %41, %cst_26 {dimension_numbers = #tpu.dot_dimension_numbers<[1], [0], [0], [1], [0, 0, 1, 1], [], []>} : vector<8x128xbf16>, vector<128x128xbf16>, vector<8x128xf32> -> vector<8x128xf32>
    %44 = arith.truncf %43 : vector<8x128xf32> to vector<8x128xbf16>
    %45 = vector.broadcast %42 : vector<1x128xbf16> to vector<8x128xbf16>
    %46 = arith.addf %44, %45 : vector<8x128xbf16>
    %47 = arith.extf %46 : vector<8x128xbf16> to vector<8x128xf32>
    %c0_27 = arith.constant 0 : index
    %c0_28 = arith.constant 0 : index
    %48 = vector.load %arg10[%c0_27, %c0_28] : memref<8x128xf32, #tpu.memory_space<vmem>>, vector<8x128xf32>
    tpu.vector_store %arg10[%c0_27, %c0_28], %47 {strides = array<i32>} : memref<8x128xf32, #tpu.memory_space<vmem>>, vector<8x128xf32>,
    return
  }
  func.func @transform_0(%arg0: i32) -> (i32, i32) {
    %c0_i32 = arith.constant 0 : i32
    %c0_i32_0 = arith.constant 0 : i32
    return %arg0, %c0_i32 : i32, i32
  }
  func.func @transform_1(%arg0: i32) -> (i32, i32) {
    %c0_i32 = arith.constant 0 : i32
    %c0_i32_0 = arith.constant 0 : i32
    %c0_i32_1 = arith.constant 0 : i32
    return %c0_i32, %c0_i32_0 : i32, i32
  }
  func.func @transform_2(%arg0: i32) -> (i32, i32) {
    %c0_i32 = arith.constant 0 : i32
    %c0_i32_0 = arith.constant 0 : i32
    %c0_i32_1 = arith.constant 0 : i32
    return %c0_i32, %c0_i32_0 : i32, i32
  }
  func.func @transform_3(%arg0: i32) -> (i32, i32) {
    %c0_i32 = arith.constant 0 : i32
    %c0_i32_0 = arith.constant 0 : i32
    %c0_i32_1 = arith.constant 0 : i32
    return %c0_i32, %c0_i32_0 : i32, i32
  }
  func.func @transform_4(%arg0: i32) -> (i32, i32) {
    %c0_i32 = arith.constant 0 : i32
    %c0_i32_0 = arith.constant 0 : i32
    %c0_i32_1 = arith.constant 0 : i32
    return %c0_i32, %c0_i32_0 : i32, i32
  }
  func.func @transform_5(%arg0: i32) -> (i32, i32) {
    %c0_i32 = arith.constant 0 : i32
    %c0_i32_0 = arith.constant 0 : i32
    %c0_i32_1 = arith.constant 0 : i32
    return %c0_i32, %c0_i32_0 : i32, i32
  }
  func.func @transform_6(%arg0: i32) -> (i32, i32) {
    %c0_i32 = arith.constant 0 : i32
    %c0_i32_0 = arith.constant 0 : i32
    %c0_i32_1 = arith.constant 0 : i32
    return %c0_i32, %c0_i32_0 : i32, i32
  }
  func.func @transform_7(%arg0: i32) -> (i32, i32) {
    %c0_i32 = arith.constant 0 : i32
    %c0_i32_0 = arith.constant 0 : i32
    %c0_i32_1 = arith.constant 0 : i32
    return %c0_i32, %c0_i32_0 : i32, i32
  }
  func.func @transform_8(%arg0: i32) -> (i32, i32) {
    %c0_i32 = arith.constant 0 : i32
    %c0_i32_0 = arith.constant 0 : i32
    %c0_i32_1 = arith.constant 0 : i32
    return %c0_i32, %c0_i32_0 : i32, i32
  }
  func.func @transform_9(%arg0: i32) -> (i32, i32) {
    %c0_i32 = arith.constant 0 : i32
    %c0_i32_0 = arith.constant 0 : i32
    return %arg0, %c0_i32 : i32, i32
  }
}

</mosaic_0001>

<bundles_post_ra>
// kernel: tpu_custom_call.1
= control target key start
LH: loop header
LB: loop body
LE: loop exit
PB: predicated region body
PF: predicated region fallthrough
CT: control target
= control target key end

     0   :  { %14 = vsyncpa [#allocation3], 0  ;;  %s964_s0 = inlined_call_operand.hbm [shape: bf16[8,128], index: 0, kind: input, shape index: {}]   ;;  %s965_s1 = inlined_call_operand.hbm [shape: bf16[128,128], index: 1, kind: input, shape index: {}]   ;;  %s966_s2 = inlined_call_operand.vmem [shape: bf16[1,128], index: 2, kind: input, shape index: {}]   ;;  %s967_s3 = inlined_call_operand.hbm [shape: bf16[128,128], index: 3, kind: input, shape index: {}]   ;;  %s968_s4 = inlined_call_operand.vmem [shape: bf16[1,128], index: 4, kind: input, shape index: {}]   ;;  %s969_s5 = inlined_call_operand.hbm [shape: bf16[128,128], index: 5, kind: input, shape index: {}]   ;;  %s970_s6 = inlined_call_operand.vmem [shape: bf16[1,128], index: 6, kind: input, shape index: {}]   ;;  %s971_s7 = inlined_call_operand.hbm [shape: bf16[128,128], index: 7, kind: input, shape index: {}]   ;;  %s972_s8 = inlined_call_operand.vmem [shape: bf16[1,128], index: 8, kind: input, shape index: {}]   ;;  %s973_s9 = inlined_call_operand.hbm [shape: f32[8,128], index: 9, kind: output, shape index: {}]  }
   0x1   :  { %15 = vsyncpa [#allocation6], 0 }
   0x2   :  { %16 = vsyncpa [#allocation9], 0  ;;  %s33_s11 = sshll.u32 %s965_s1, 4  ;;  %s34_s11 = int_to_ptr.hbm [resolvable:$true] %s33_s11 }
   0x3   :  { %17 = vsyncpa [#allocation4], 0  ;;  %s876_s12 = smov [#allocation5]   ;;  %s63_s16 = sshll.u32 %s969_s5, 4  ;;  %s64_s16 = int_to_ptr.hbm [resolvable:$true] %s63_s16 }
   0x4   :  { %s35_s13 = sshll.u32 %s876_s12, 4  ;;  %s877_s17 = smov 64   ;;  %s36_s13 = int_to_ptr.vmem [resolvable:$true] %s35_s13 }
   0x5   :  { %s878_s18 = smov 4   ;;  %s879_s19 = smov [#allocation8]  }
   0x6   :  { %41 = dma.hbm_to_vmem [thread:$0]  %s34_s11, 1024, %s36_s13, [#allocation6], %s877_s17, %s877_s17, %s878_s18  }
   0x7   :  { %s65_s20 = sshll.u32 %s879_s19, 4  ;;  %s23_s23 = sshll.u32 %s964_s0, 4  ;;  %s66_s20 = int_to_ptr.vmem [resolvable:$true] %s65_s20  ;;  %s24_s23 = int_to_ptr.hbm [resolvable:$true] %s23_s23 }
   0x8   :  { %71 = dma.hbm_to_vmem [thread:$0]  %s64_s16, 1024, %s66_s20, [#allocation9], %s877_s17, %s877_s17, %s878_s18  }
   0x9   :  { %s48_s25 = sshll.u32 %s967_s3, 4  ;;  %s880_s26 = smov [#allocation2]   ;;  %s49_s25 = int_to_ptr.hbm [resolvable:$true] %s48_s25 }
   0xa   :  { %s25_s27 = sshll.u32 %s880_s26, 4  ;;  %s881_s5 = smov [#allocation7]   ;;  %s26_s27 = int_to_ptr.vmem [resolvable:$true] %s25_s27 }
   0xb   :  { %28 = dma.hbm_to_vmem [thread:$0]  %s24_s23, 64, %s26_s27, [#allocation3]  }
   0xc   :  { %s50_s28 = sshll.u32 %s881_s5, 4  ;;  %s78_s10 = sshll.u32 %s971_s7, 4  ;;  %s51_s28 = int_to_ptr.vmem [resolvable:$true] %s50_s28  ;;  %s79_s10 = int_to_ptr.hbm [resolvable:$true] %s78_s10 }
   0xd   :  { %56 = dma.hbm_to_vmem [thread:$0]  %s49_s25, 1024, %s51_s28, [#allocation6], %s877_s17, %s877_s17, %s878_s18  }
   0xe   :  { %s882_s0 = smov [#allocation10]  }
   0xf   :  { %s80_s11 = sshll.u32 %s882_s0, 4  ;;  %s81_s11 = int_to_ptr.vmem [resolvable:$true] %s80_s11 }
  0x10   :  { %86 = dma.hbm_to_vmem [thread:$0]  %s79_s10, 1024, %s81_s11, [#allocation9], %s877_s17, %s877_s17, %s878_s18  }
  0x11   :  { %868 = dma.done.wait [#allocation3], 64  }
  0x12   :  { %869 = vsyncadd [#allocation3], 4294967232 }
  0x13   :  { %870 = dma.done.wait [#allocation6], 2048  }
  0x14   :  { %871 = vsyncadd [#allocation6], 4294965248 }
  0x15   :  { %872 = dma.done.wait [#allocation9], 2048  }
  0x16   :  { %873 = vsyncadd [#allocation9], 4294965248  ;;  %v691_v0 = vld [vmem:[#allocation5 + $0x38] sm:$0xff]  ;;  %v690_v1 = vld [vmem:[#allocation5 + $0x30] sm:$0xff]  ;;  %s883_s15 = smov [#allocation11]   ;;  %s544_s19 = sshll.u32 %s973_s9, 4  ;;  %s545_s19 = int_to_ptr.hbm [resolvable:$true] %s544_s19 }
  0x17   :  { %209 = vmatpush.bf16.msra.mxu0 %v691_v0  ;;  %v699_v2 = vld [vmem:[#allocation7 + $0x38] sm:$0xff]  ;;  %v698_v3 = vld [vmem:[#allocation7 + $0x30] sm:$0xff]  ;;  %v689_v4 = vld [vmem:[#allocation5 + $0x28] sm:$0xff]  ;;  %s542_s16 = sshll.u32 %s883_s15, 4  ;;  %s543_s16 = int_to_ptr.vmem [resolvable:$true] %s542_s16 }
  0x18   :  { %279 = vmatpush.bf16.msra.mxu1 %v699_v2  ;;  %374 = vmatpush.bf16.msra.mxu3 %v699_v2  ;;  %v697_v5 = vld [vmem:[#allocation7 + $0x28] sm:$0xff]  ;;  %v688_v6 = vld [vmem:[#allocation5 + $0x20] sm:$0xff]  ;;  %v687_v8 = vld [vmem:[#allocation5 + $0x18] sm:$0xff] }
  0x19   :  { %v696_v7 = vld [vmem:[#allocation7 + $0x20] sm:$0xff]  ;;  %v695_v9 = vld [vmem:[#allocation7 + $0x18] sm:$0xff]  ;;  %v686_v10 = vld [vmem:[#allocation5 + $0x10] sm:$0xff] }
  0x1a   :  { %v694_v11 = vld [vmem:[#allocation7 + $0x10] sm:$0xff]  ;;  %v685_v12 = vld [vmem:[#allocation5 + $0x8] sm:$0xff]  ;;  %v684_v13 = vld [vmem:[#allocation5] sm:$0xff] }
  0x1b   :  { %210 = vmatpush.bf16.msra.mxu0 %v690_v1  ;;  %v109_v14 = vld [vmem:[#allocation2] sm:$0xf]  ;;  %v693_v15 = vld [vmem:[#allocation7 + $0x8] sm:$0xff]  ;;  %v692_v16 = vld [vmem:[#allocation7] sm:$0xff] }
  0x1c   :  { %280 = vmatpush.bf16.msra.mxu1 %v698_v3  ;;  %375 = vmatpush.bf16.msra.mxu3 %v698_v3  ;;  %v707_v17 = vld [vmem:[#allocation8 + $0x38] sm:$0xff]  ;;  %v706_v18 = vld [vmem:[#allocation8 + $0x30] sm:$0xff]  ;;  %v705_v19 = vld [vmem:[#allocation8 + $0x28] sm:$0xff] }
  0x1d   :  { %352 = vmatpush.bf16.msra.mxu2 %v707_v17  ;;  %v704_v20 = vld [vmem:[#allocation8 + $0x20] sm:$0xff]  ;;  %v158_v21 = vld [vmem:[%s966_s2] sm:$0x1]  ;;  %v702_v32 = vld [vmem:[#allocation8 + $0x10] sm:$0xff] }
  0x1e   :  { %v703_v22 = vld [vmem:[#allocation8 + $0x18] sm:$0xff]  ;;  %v224_v23 = vpack.i.b16 %v158_v21, %v158_v21  ;;  %v701_v33 = vld [vmem:[#allocation8 + $0x8] sm:$0xff]  ;;  %v700_v34 = vld [vmem:[#allocation8] sm:$0xff] }
  0x1f   :  { %211 = vmatpush.bf16.msra.mxu0 %v689_v4  ;;  %v159_v35 = vld [vmem:[%s968_s4] sm:$0x1] }
  0x20   :  { %281 = vmatpush.bf16.msra.mxu1 %v697_v5  ;;  %376 = vmatpush.bf16.msra.mxu3 %v697_v5  ;;  %v226_v24 = vperm.slane %v224_v23, 0  ;;  %v294_v36 = vpack.i.b16 %v159_v35, %v159_v35  ;;  %v160_v46 = vld [vmem:[%s970_s6] sm:$0x1] }
  0x21   :  { %353 = vmatpush.bf16.msra.mxu2 %v706_v18  ;;  %v367_v47 = vpack.i.b16 %v160_v46, %v160_v46 }
  0x22   :  { %v228_v27 = vunpack.c.l.bf16 %v226_v24  ;;  %v296_v37 = vperm.slane %v294_v36, 0 }
  0x23   :  { %212 = vmatpush.bf16.msra.mxu0 %v688_v6  ;;  %v369_v48 = vperm.slane %v367_v47, 0  ;;  %v714_v6 = vld [vmem:[#allocation10 + $0x30] sm:$0xff] }
  0x24   :  { %282 = vmatpush.bf16.msra.mxu1 %v696_v7  ;;  %377 = vmatpush.bf16.msra.mxu3 %v696_v7  ;;  %v298_v40 = vunpack.c.l.bf16 %v296_v37 }
  0x25   :  { %354 = vmatpush.bf16.msra.mxu2 %v705_v19  ;;  %v371_v51 = vunpack.c.l.bf16 %v369_v48 }
  0x27   :  { %213 = vmatpush.bf16.msra.mxu0 %v687_v8  ;;  %v712_v8 = vld [vmem:[#allocation10 + $0x20] sm:$0xff] }
  0x28   :  { %283 = vmatpush.bf16.msra.mxu1 %v695_v9  ;;  %378 = vmatpush.bf16.msra.mxu3 %v695_v9 }
  0x29   :  { %355 = vmatpush.bf16.msra.mxu2 %v704_v20 }
  0x2b   :  { %214 = vmatpush.bf16.msra.mxu0 %v686_v10  ;;  %v710_v10 = vld [vmem:[#allocation10 + $0x10] sm:$0xff] }
  0x2c   :  { %284 = vmatpush.bf16.msra.mxu1 %v694_v11  ;;  %379 = vmatpush.bf16.msra.mxu3 %v694_v11 }
  0x2d   :  { %356 = vmatpush.bf16.msra.mxu2 %v703_v22 }
  0x2f   :  { %215 = vmatpush.bf16.msra.mxu0 %v685_v12 }
  0x30   :  { %285 = vmatpush.bf16.msra.mxu1 %v693_v15  ;;  %380 = vmatpush.bf16.msra.mxu3 %v693_v15 }
  0x31   :  { %357 = vmatpush.bf16.msra.mxu2 %v702_v32 }
  0x33   :  { %216 = vmatpush.bf16.msra.mxu0 %v684_v13 }
  0x34   :  { %286 = vmatpush.bf16.msra.mxu1 %v692_v16  ;;  %381 = vmatpush.bf16.msra.mxu3 %v692_v16 }
  0x35   :  { %358 = vmatpush.bf16.msra.mxu2 %v701_v33 }
  0x36   :  { %217 = vmatmul.bf16.vlgmr.msra.gmra.mxu0 %v109_v14 }
  0x37   :  { %394 = vmatpush.bf16.msrb.mxu0 %v707_v17 }
  0x38   :  { %411 = vmatpush.bf16.msrb.mxu1 %v699_v2 }
  0x39   :  { %359 = vmatpush.bf16.msra.mxu2 %v700_v34 }
  0x3b   :  { %395 = vmatpush.bf16.msrb.mxu0 %v706_v18 }
  0x3c   :  { %412 = vmatpush.bf16.msrb.mxu1 %v698_v3 }
  0x3d   :  { %431 = vmatpush.bf16.msrb.mxu2 %v707_v17 }
  0x3f   :  { %396 = vmatpush.bf16.msrb.mxu0 %v705_v19 }
  0x40   :  { %413 = vmatpush.bf16.msrb.mxu1 %v697_v5  ;;  %v715_v5 = vld [vmem:[#allocation10 + $0x38] sm:$0xff] }
  0x41   :  { %432 = vmatpush.bf16.msrb.mxu2 %v706_v18  ;;  %513 = vmatpush.bf16.msrb.mxu3 %v715_v5  ;;  %v709_v18 = vld [vmem:[#allocation10 + $0x8] sm:$0xff] }
  0x43   :  { %397 = vmatpush.bf16.msrb.mxu0 %v704_v20 }
  0x44   :  { %414 = vmatpush.bf16.msrb.mxu1 %v696_v7  ;;  %v713_v7 = vld [vmem:[#allocation10 + $0x28] sm:$0xff] }
  0x45   :  { %433 = vmatpush.bf16.msrb.mxu2 %v705_v19  ;;  %514 = vmatpush.bf16.msrb.mxu3 %v714_v6  ;;  %v708_v19 = vld [vmem:[#allocation10] sm:$0xff] }
  0x47   :  { %398 = vmatpush.bf16.msrb.mxu0 %v703_v22 }
  0x48   :  { %415 = vmatpush.bf16.msrb.mxu1 %v695_v9  ;;  %v711_v9 = vld [vmem:[#allocation10 + $0x18] sm:$0xff] }
  0x49   :  { %434 = vmatpush.bf16.msrb.mxu2 %v704_v20  ;;  %515 = vmatpush.bf16.msrb.mxu3 %v713_v7 }
  0x4b   :  { %399 = vmatpush.bf16.msrb.mxu0 %v702_v32 }
  0x4c   :  { %416 = vmatpush.bf16.msrb.mxu1 %v694_v11 }
  0x4d   :  { %435 = vmatpush.bf16.msrb.mxu2 %v703_v22  ;;  %516 = vmatpush.bf16.msrb.mxu3 %v712_v8 }
  0x4f   :  { %400 = vmatpush.bf16.msrb.mxu0 %v701_v33 }
  0x50   :  { %417 = vmatpush.bf16.msrb.mxu1 %v693_v15 }
  0x51   :  { %436 = vmatpush.bf16.msrb.mxu2 %v702_v32  ;;  %517 = vmatpush.bf16.msrb.mxu3 %v711_v9 }
  0x53   :  { %401 = vmatpush.bf16.msrb.mxu0 %v700_v34 }
  0x54   :  { %418 = vmatpush.bf16.msrb.mxu1 %v692_v16 }
  0x55   :  { %437 = vmatpush.bf16.msrb.mxu2 %v701_v33  ;;  %518 = vmatpush.bf16.msrb.mxu3 %v710_v10 }
  0x59   :  { %438 = vmatpush.bf16.msrb.mxu2 %v700_v34  ;;  %519 = vmatpush.bf16.msrb.mxu3 %v709_v18 }
  0x5d   :  { %520 = vmatpush.bf16.msrb.mxu3 %v708_v19 }
  0xb3   :  { %v218_v25 = vpop.f32.mrf.mxu0 }
  0xb4   :  { %v222_v26 = vpack.c.bf16 %v218_v25, %v218_v25 }
  0xb6   :  { %v227_v28 = vunpack.c.l.bf16 %v222_v26  ;;  %v464_v26 = vld [vmem:[%s972_s8] sm:$0x1] }
  0xb8   :  { %v229_v29 = vadd.f32 %v228_v27, %v227_v28  ;;  %v528_v27 = vpack.i.b16 %v464_v26, %v464_v26 }
  0xba   :  { %v230_v30 = vpack.c.bf16 %v229_v29, %v229_v29  ;;  %v530_v28 = vperm.slane %v528_v27, 0 }
  0xbb   :  { %v220_v31 = vpop.f32.mrf.mxu0 }
  0xbc   :  { %287 = vmatmul.bf16.vlgmr.msra.gmra.mxu1 %v230_v30  ;;  %v532_v31 = vunpack.c.l.bf16 %v530_v28 }
 0x139   :  { %v288_v38 = vpop.f32.mrf.mxu1 }
 0x13a   :  { %v292_v39 = vpack.c.bf16 %v288_v38, %v288_v38 }
 0x13c   :  { %v297_v41 = vunpack.c.l.bf16 %v292_v39 }
 0x13e   :  { %v299_v42 = vadd.f32 %v298_v40, %v297_v41 }
 0x140   :  { %v302_v43 = vmax.f32 %v299_v42, 0.0 }
 0x141   :  { %v290_v44 = vpop.f32.mrf.mxu1 }
 0x142   :  { %v303_v45 = vpack.c.bf16 %v302_v43, %v302_v43 }
 0x144   :  { %360 = vmatmul.bf16.vlgmr.msra.gmra.mxu2 %v303_v45 }
 0x1c7   :  { %v361_v49 = vpop.f32.mrf.mxu2 }
 0x1c8   :  { %v365_v50 = vpack.c.bf16 %v361_v49, %v361_v49 }
 0x1ca   :  { %v370_v52 = vunpack.c.l.bf16 %v365_v50 }
 0x1cc   :  { %v372_v53 = vadd.f32 %v371_v51, %v370_v52 }
 0x1ce   :  { %v373_v54 = vpack.c.bf16 %v372_v53, %v372_v53 }
 0x1cf   :  { %v363_v55 = vpop.f32.mrf.mxu2 }
 0x1d0   :  { %382 = vmatmul.bf16.vlgmr.msra.gmra.mxu3 %v373_v54 }
 0x253   :  { %v383_v56 = vpop.f32.mrf.mxu3 }
 0x254   :  { %v387_v57 = vpack.c.bf16 %v383_v56, %v383_v56 }
 0x256   :  { %v388_v58 = vunpack.c.l.bf16 %v387_v57 }
 0x258   :  { %v389_v59 = vadd.f32 %v388_v58, %v298_v40 }
 0x25a   :  { %v392_v60 = vmax.f32 %v389_v59, 0.0 }
 0x25b   :  { %v385_v61 = vpop.f32.mrf.mxu3 }
 0x25c   :  { %v393_v62 = vpack.c.bf16 %v392_v60, %v392_v60 }
 0x25e   :  { %402 = vmatmul.bf16.vlgmr.msrb.gmra.mxu0 %v393_v62 }
 0x2db   :  { %v403_v63 = vpop.f32.mrf.mxu0 }
 0x2dc   :  { %v407_v0 = vpack.c.bf16 %v403_v63, %v403_v63 }
 0x2de   :  { %v408_v1 = vunpack.c.l.bf16 %v407_v0 }
 0x2e0   :  { %v409_v2 = vadd.f32 %v408_v1, %v371_v51 }
 0x2e2   :  { %v410_v3 = vpack.c.bf16 %v409_v2, %v409_v2 }
 0x2e3   :  { %v405_v4 = vpop.f32.mrf.mxu0 }
 0x2e4   :  { %419 = vmatmul.bf16.vlgmr.msrb.gmra.mxu1 %v410_v3 }
 0x361   :  { %v420_v11 = vpop.f32.mrf.mxu1 }
 0x362   :  { %v424_v12 = vpack.c.bf16 %v420_v11, %v420_v11 }
 0x364   :  { %v425_v13 = vunpack.c.l.bf16 %v424_v12 }
 0x366   :  { %v426_v14 = vadd.f32 %v425_v13, %v298_v40 }
 0x368   :  { %v429_v15 = vmax.f32 %v426_v14, 0.0 }
 0x369   :  { %v422_v16 = vpop.f32.mrf.mxu1 }
 0x36a   :  { %v430_v17 = vpack.c.bf16 %v429_v15, %v429_v15 }
 0x36c   :  { %439 = vmatmul.bf16.vlgmr.msrb.gmra.mxu2 %v430_v17 }
 0x3ef   :  { %v440_v20 = vpop.f32.mrf.mxu2 }
 0x3f0   :  { %v444_v21 = vpack.c.bf16 %v440_v20, %v440_v20 }
 0x3f2   :  { %v445_v22 = vunpack.c.l.bf16 %v444_v21 }
 0x3f4   :  { %v446_v23 = vadd.f32 %v445_v22, %v371_v51 }
 0x3f6   :  { %v447_v24 = vpack.c.bf16 %v446_v23, %v446_v23 }
 0x3f7   :  { %v442_v25 = vpop.f32.mrf.mxu2 }
 0x3f8   :  { %521 = vmatmul.bf16.vlgmr.msrb.gmra.mxu3 %v447_v24 }
 0x47b   :  { %v522_v29 = vpop.f32.mrf.mxu3 }
 0x47c   :  { %v526_v30 = vpack.c.bf16 %v522_v29, %v522_v29 }
 0x47e   :  { %v531_v32 = vunpack.c.l.bf16 %v526_v30 }
 0x480   :  { %v533_v33 = vadd.f32 %v532_v31, %v531_v32 }
 0x482   :  { %v534_v34 = vpack.c.bf16 %v533_v33, %v533_v33 }
 0x483   :  { %v524_v35 = vpop.f32.mrf.mxu3 }
 0x484   :  { %v535_v36 = vunpack.c.l.bf16 %v534_v34 }
 0x486   :  { %536 = vst [vmem:[#allocation11] sm:$0xff] %v535_v36 }
 0x487   :  { %547 = dma.vmem_to_hbm [thread:$0]  %s543_s16, 128, %s545_s19, [#allocation4]  }
 0x488   :  { %874 = dma.done.wait [#allocation4], 128  }
 0x489   :  { %875 = vsyncadd [#allocation4], 4294967168 }
 0x48a   :  { %552 = vsyncpa [#allocation3], 1 }
 0x48b   :  { %553 = vsyncpa [#allocation6], 1 }
 0x48c   :  { %554 = vsyncpa [#allocation9], 1 }
 0x48d   :  { %555 = vsyncpa [#allocation4], 1 }

</bundles_post_ra>
